<compile_context>
chip_gen: v6e
topology: v6e:2x2x1
jax: 0.10.0
libtpu: 0.0.40
codegen_flags: <defaults>
</compile_context>

<pallas_src>
import functools

import jax
import jax.numpy as jnp
from jax import lax
from jax.experimental import pallas as pl
from jax.experimental.pallas import tpu as pltpu


def _round_up(x, m):
    return (x + m - 1) // m * m


# ------------------- fused Conv2d + BatchNorm2d + LeakyReLU (one Cout tile) ------------------- #
def basic_conv_fused_kernel(x_ref, w_ref, g_ref, b_ref, o_ref, *,
                            N, Lpad, W, Hout, Wout, K, eps, slope):
    # x_ref : (Cin, N*Lpad + tail) f32  images concatenated on the lane axis (lane-aligned slots)
    # w_ref : (TCOUT, K*K*Cin)     bf16 im2col weight, columns ordered (kh, kw, ci)
    # g_ref : (TCOUT, 1) f32 gamma   b_ref : (TCOUT, 1) f32 beta
    # o_ref : (TCOUT, N*Lpad)      f32 "wide" output; garbage columns masked from BN stats
    NL = N * Lpad
    x = x_ref[...]

    # ---- im2col patches for the WHOLE batch: one static lane-window slice per tap ----
    # Wide-output column n*Lpad + j (j = oh*W + ow) of tap (kh, kw) reads flat lane
    # n*Lpad + j + kh*W + kw; for valid (oh < Hout, ow < Wout) this never leaves image n.
    taps = []
    for kh in range(K):
        for kw in range(K):
            off = kh * W + kw
            taps.append(x[:, off:off + NL])              # (Cin, N*Lpad)
    patches = jnp.concatenate(taps, axis=0)              # (K*K*Cin, N*Lpad)
    # TODO(synk): at GAN widths (Cin~512) skip materializing the im2col buffer and
    #             accumulate K*K dot(w_tap, x_shifted) matmuls (or use pltpu.roll).

    # ---- Conv2d: ONE bf16 MXU matmul for this Cout tile over the whole batch (f32 acc) ----
    conv = jnp.dot(w_ref[...], patches.astype(jnp.bfloat16),
                   preferred_element_type=jnp.float32)   # (TCOUT, N*Lpad)

    # ---- train-mode BatchNorm2d stats: one masked pass, lane (XLU) reductions ----
    j = lax.broadcasted_iota(jnp.int32, (1, NL), 1)
    p = j % Lpad                                         # position inside the image slot
    valid = (p < Hout * W) & ((p % W) < Wout)            # drop conv-overhang / pad columns
    cnt = float(N * Hout * Wout)

    masked = jnp.where(valid, conv, 0.0)
    s1 = jnp.sum(masked, axis=1, keepdims=True)          # (TCOUT, 1)
    s2 = jnp.sum(masked * masked, axis=1, keepdims=True) # (TCOUT, 1)
    mean = s1 * (1.0 / cnt)
    var = jnp.maximum(s2 * (1.0 / cnt) - mean * mean, 0.0)   # biased (PyTorch train-mode)

    # ---- fused normalize + affine + LeakyReLU(slope): y = conv*scale + shift ----
    scale = g_ref[...] * lax.rsqrt(var + eps)            # (TCOUT, 1)
    shift = b_ref[...] - mean * scale
    y = conv * scale + shift
    y = jnp.where(y > 0, y, slope * y)

    o_ref[...] = y.astype(o_ref.dtype)                   # lane-dense, unmasked store


# -------------------------------------------- wrapper -------------------------------------------- #
def basic_conv(x_nchw, weight, bias, gamma, beta,
               kernel_size=3, stride=1, padding=0, eps=1e-5, negative_slope=0.2):
    """Forward pass of BasicConv. x_nchw: (N, Cin, H, W) f32; weight: (Cout, Cin, K, K)."""
    # TODO(synk): only the module defaults stride=1, padding=0 are implemented here.
    assert stride == 1 and padding == 0
    K = kernel_size
    N, Cin, H, W = x_nchw.shape
    Cout = weight.shape[0]
    Hout, Wout = H - K + 1, W - K + 1
    HW = H * W

    # Conv bias cancels exactly under train-mode BatchNorm -> intentionally unused.
    del bias

    # Lane-aligned input slab: each image occupies a slot of Lpad (multiple of 128) lanes,
    # plus one extra lane tile so the widest tap slice on the last image stays in bounds.
    Lpad = _round_up(HW, 128)
    max_off = (K - 1) * W + (K - 1)
    tail = _round_up(max_off, 128) if max_off > 0 else 0

    x2 = jnp.transpose(x_nchw, (1, 0, 2, 3)).reshape(Cin, N, HW).astype(jnp.float32)
    if Lpad > HW:
        x2 = jnp.pad(x2, ((0, 0), (0, 0), (0, Lpad - HW)))
    x2 = x2.reshape(Cin, N * Lpad)
    if tail > 0:
        x2 = jnp.pad(x2, ((0, 0), (0, tail)))
    Ltot = N * Lpad + tail

    # im2col weight (bf16 MXU operand), columns ordered (kh, kw, ci) to match the kernel taps.
    w2 = jnp.transpose(weight, (0, 2, 3, 1)).reshape(Cout, K * K * Cin).astype(jnp.bfloat16)
    g = gamma.reshape(Cout, 1).astype(jnp.float32)
    b = beta.reshape(Cout, 1).astype(jnp.float32)

    # Grid over Cout tiles (per-channel BN stats are independent across channels) -> the
    # "parallel" axis shards across v7x's two TensorCores; single tile at toy widths.
    tcout = Cout if Cout <= 128 else 128
    assert Cout % tcout == 0, "Cout must be a multiple of the Cout tile size"
    # TODO(synk): at GAN widths also tile spatially and re-budget vmem_limit_bytes so the
    #             whole-batch-resident body fits v7x's 64 MiB VMEM.

    kern = functools.partial(basic_conv_fused_kernel, N=N, Lpad=Lpad, W=W,
                             Hout=Hout, Wout=Wout, K=K, eps=eps, slope=negative_slope)
    out2 = pl.pallas_call(
        kern,
        out_shape=jax.ShapeDtypeStruct((Cout, N * Lpad), jnp.float32),
        grid=(Cout // tcout,),
        in_specs=[
            pl.BlockSpec((Cin, Ltot), lambda c: (0, 0)),
            pl.BlockSpec((tcout, K * K * Cin), lambda c: (c, 0)),
            pl.BlockSpec((tcout, 1), lambda c: (c, 0)),
            pl.BlockSpec((tcout, 1), lambda c: (c, 0)),
        ],
        out_specs=pl.BlockSpec((tcout, N * Lpad), lambda c: (c, 0)),
        compiler_params=pltpu.CompilerParams(
            dimension_semantics=("parallel",),
            vmem_limit_bytes=32 * 1024 * 1024),
    )(x2, w2, g, b)

    # Cheap wrapper-side reshapes/crops of the wide garbage columns -> NCHW output.
    out = out2.reshape(Cout, N, Lpad)[:, :, :Hout * W]
    out = out.reshape(Cout, N, Hout, W)[:, :, :, :Wout]
    return jnp.transpose(out, (1, 0, 2, 3))


if __name__ == "__main__":
    N, Cin, Cout, H, W, K = 2, 4, 8, 16, 16, 3

    key = jax.random.PRNGKey(0)
    kx, kw_, kb, kg, kbeta = jax.random.split(key, 5)

    x = jax.random.normal(kx, (N, Cin, H, W), dtype=jnp.float32)
    weight = 0.1 * jax.random.normal(kw_, (Cout, Cin, K, K), dtype=jnp.float32)  # Conv2d weight
    bias = 0.1 * jax.random.normal(kb, (Cout,), dtype=jnp.float32)
    gamma = 1.0 + 0.1 * jax.random.normal(kg, (Cout,), dtype=jnp.float32)
    beta = 0.1 * jax.random.normal(kbeta, (Cout,), dtype=jnp.float32)

    out = jax.jit(basic_conv)(x, weight, bias, gamma, beta)
    jax.block_until_ready(out)
    assert out.shape == (N, Cout, H - K + 1, W - K + 1)

    # Pure-JAX reference: Conv2d (+bias) -> train-mode BatchNorm2d -> LeakyReLU(0.2).
    # The conv operands are rounded to bf16 to mirror the kernel's bf16 MXU path
    # (both accumulate in f32); BN/LeakyReLU are f32 in both.
    xb = x.astype(jnp.bfloat16).astype(jnp.float32)
    wb = weight.astype(jnp.bfloat16).astype(jnp.float32)
    conv = lax.conv_general_dilated(
        xb, wb, window_strides=(1, 1), padding="VALID",
        dimension_numbers=("NCHW", "OIHW", "NCHW"),
        precision=lax.Precision.HIGHEST)
    conv = conv + bias.reshape(1, Cout, 1, 1)
    m = jnp.mean(conv, axis=(0, 2, 3), keepdims=True)
    v = jnp.mean((conv - m) ** 2, axis=(0, 2, 3), keepdims=True)
    ref = (conv - m) * lax.rsqrt(v + 1e-5) * gamma.reshape(1, Cout, 1, 1) \
        + beta.reshape(1, Cout, 1, 1)
    ref = jnp.where(ref > 0, ref, 0.2 * ref)

    err = float(jnp.max(jnp.abs(out - ref)))
    assert jnp.allclose(out, ref, atol=2e-3, rtol=2e-3), err
    print("KERNEL_OK")
</pallas_src>

<mosaic_0001>
module attributes {stable_mosaic.version = 11 : i64} {
  func.func @basic_conv_fused_kernel(%arg0: i32, %arg1: memref<4x640xf32, #tpu.memory_space<vmem>>, %arg2: memref<8x36xbf16, #tpu.memory_space<vmem>>, %arg3: memref<8x1xf32, #tpu.memory_space<vmem>>, %arg4: memref<8x1xf32, #tpu.memory_space<vmem>>, %arg5: memref<8x512xf32, #tpu.memory_space<vmem>>) attributes {dimension_semantics = [#tpu.dimension_semantics<parallel>], iteration_bounds = array<i64: 1>, scalar_prefetch = 0 : i64, scratch_operands = 0 : i64, tpu.core_type = #tpu.core_type<tc>, window_params = [{pipeline_mode = #tpu.pipeline_mode<synchronous>, transform_indices = @transform_0, window_bounds = array<i64: 4, 640>}, {transform_indices = @transform_1, window_bounds = array<i64: 8, 36>}, {transform_indices = @transform_2, window_bounds = array<i64: 8, 1>}, {transform_indices = @transform_3, window_bounds = array<i64: 8, 1>}, {transform_indices = @transform_4, window_bounds = array<i64: 8, 512>}]} {
    %c0 = arith.constant 0 : index
    %c0_0 = arith.constant 0 : index
    %0 = vector.load %arg1[%c0, %c0_0] : memref<4x640xf32, #tpu.memory_space<vmem>>, vector<4x640xf32>
    %1 = vector.extract_strided_slice %0 {offsets = [0, 0], sizes = [4, 512], strides = [1, 1]} : vector<4x640xf32> to vector<4x512xf32>
    %2 = vector.extract_strided_slice %0 {offsets = [0, 1], sizes = [4, 512], strides = [1, 1]} : vector<4x640xf32> to vector<4x512xf32>
    %3 = vector.extract_strided_slice %0 {offsets = [0, 2], sizes = [4, 512], strides = [1, 1]} : vector<4x640xf32> to vector<4x512xf32>
    %4 = vector.extract_strided_slice %0 {offsets = [0, 16], sizes = [4, 512], strides = [1, 1]} : vector<4x640xf32> to vector<4x512xf32>
    %5 = vector.extract_strided_slice %0 {offsets = [0, 17], sizes = [4, 512], strides = [1, 1]} : vector<4x640xf32> to vector<4x512xf32>
    %6 = vector.extract_strided_slice %0 {offsets = [0, 18], sizes = [4, 512], strides = [1, 1]} : vector<4x640xf32> to vector<4x512xf32>
    %7 = vector.extract_strided_slice %0 {offsets = [0, 32], sizes = [4, 512], strides = [1, 1]} : vector<4x640xf32> to vector<4x512xf32>
    %8 = vector.extract_strided_slice %0 {offsets = [0, 33], sizes = [4, 512], strides = [1, 1]} : vector<4x640xf32> to vector<4x512xf32>
    %9 = vector.extract_strided_slice %0 {offsets = [0, 34], sizes = [4, 512], strides = [1, 1]} : vector<4x640xf32> to vector<4x512xf32>
    %10 = tpu.concatenate %1, %2, %3, %4, %5, %6, %7, %8, %9 in 0 : vector<4x512xf32>, vector<4x512xf32>, vector<4x512xf32>, vector<4x512xf32>, vector<4x512xf32>, vector<4x512xf32>, vector<4x512xf32>, vector<4x512xf32>, vector<4x512xf32> -> vector<36x512xf32>
    %c0_1 = arith.constant 0 : index
    %c0_2 = arith.constant 0 : index
    %11 = vector.load %arg2[%c0_1, %c0_2] : memref<8x36xbf16, #tpu.memory_space<vmem>>, vector<8x36xbf16>
    %12 = arith.truncf %10 : vector<36x512xf32> to vector<36x512xbf16>
    %cst = arith.constant dense<0.000000e+00> : vector<8x512xf32>
    %13 = tpu.matmul %11, %12, %cst {dimension_numbers = #tpu.dot_dimension_numbers<[1], [0], [0], [1], [0, 0, 1, 1], [], []>} : vector<8x36xbf16>, vector<36x512xbf16>, vector<8x512xf32> -> vector<8x512xf32>
    %14 = tpu.iota {dimensions = array<i32: 1>} : vector<1x512xi32>
    %c256_i32 = arith.constant 256 : i32
    %c0_i32 = arith.constant 0 : i32
    %15 = arith.cmpi eq, %c256_i32, %c0_i32 : i32
    %c1_i32 = arith.constant 1 : i32
    %16 = arith.select %15, %c1_i32, %c256_i32 : i32
    %17 = vector.broadcast %16 : i32 to vector<1x512xi32>
    %18 = arith.remsi %14, %17 : vector<1x512xi32>
    %c0_i32_3 = arith.constant 0 : i32
    %19 = vector.broadcast %c0_i32_3 : i32 to vector<1x512xi32>
    %20 = arith.cmpi ne, %18, %19 : vector<1x512xi32>
    %c0_i32_4 = arith.constant 0 : i32
    %21 = vector.broadcast %c0_i32_4 : i32 to vector<1x512xi32>
    %22 = arith.cmpi slt, %18, %21 : vector<1x512xi32>
    %c0_i32_5 = arith.constant 0 : i32
    %23 = arith.cmpi slt, %16, %c0_i32_5 : i32
    %24 = vector.broadcast %23 : i1 to vector<1x512xi1>
    %25 = vector.broadcast %24 : vector<1x512xi1> to vector<1x512xi1>
    %26 = arith.xori %22, %25 : vector<1x512xi1>
    %27 = arith.andi %26, %20 : vector<1x512xi1>
    %28 = vector.broadcast %16 : i32 to vector<1x512xi32>
    %29 = arith.addi %18, %28 : vector<1x512xi32>
    %30 = arith.select %27, %29, %18 : vector<1x512xi1>, vector<1x512xi32>
    %c224_i32 = arith.constant 224 : i32
    %31 = vector.broadcast %c224_i32 : i32 to vector<1x512xi32>
    %32 = arith.cmpi slt, %30, %31 : vector<1x512xi32>
    %c16_i32 = arith.constant 16 : i32
    %c0_i32_6 = arith.constant 0 : i32
    %33 = arith.cmpi eq, %c16_i32, %c0_i32_6 : i32
    %c1_i32_7 = arith.constant 1 : i32
    %34 = arith.select %33, %c1_i32_7, %c16_i32 : i32
    %35 = vector.broadcast %34 : i32 to vector<1x512xi32>
    %36 = arith.remsi %30, %35 : vector<1x512xi32>
    %c0_i32_8 = arith.constant 0 : i32
    %37 = vector.broadcast %c0_i32_8 : i32 to vector<1x512xi32>
    %38 = arith.cmpi ne, %36, %37 : vector<1x512xi32>
    %c0_i32_9 = arith.constant 0 : i32
    %39 = vector.broadcast %c0_i32_9 : i32 to vector<1x512xi32>
    %40 = arith.cmpi slt, %36, %39 : vector<1x512xi32>
    %c0_i32_10 = arith.constant 0 : i32
    %41 = arith.cmpi slt, %34, %c0_i32_10 : i32
    %42 = vector.broadcast %41 : i1 to vector<1x512xi1>
    %43 = vector.broadcast %42 : vector<1x512xi1> to vector<1x512xi1>
    %44 = arith.xori %40, %43 : vector<1x512xi1>
    %45 = arith.andi %44, %38 : vector<1x512xi1>
    %46 = vector.broadcast %34 : i32 to vector<1x512xi32>
    %47 = arith.addi %36, %46 : vector<1x512xi32>
    %48 = arith.select %45, %47, %36 : vector<1x512xi1>, vector<1x512xi32>
    %c14_i32 = arith.constant 14 : i32
    %49 = vector.broadcast %c14_i32 : i32 to vector<1x512xi32>
    %50 = arith.cmpi slt, %48, %49 : vector<1x512xi32>
    %51 = arith.andi %32, %50 : vector<1x512xi1>
    %cst_11 = arith.constant 0.000000e+00 : f32
    %52 = vector.shape_cast %51 : vector<1x512xi1> to vector<1x512xi1>
    %53 = vector.broadcast %52 : vector<1x512xi1> to vector<8x512xi1>
    %54 = vector.broadcast %cst_11 : f32 to vector<8x512xf32>
    %55 = arith.select %53, %13, %54 : vector<8x512xi1>, vector<8x512xf32>
    %cst_12 = arith.constant dense<0.000000e+00> : vector<8xf32>
    %56 = vector.multi_reduction <add>, %55, %cst_12 [1] : vector<8x512xf32> to vector<8xf32>
    %57 = vector.shape_cast %56 : vector<8xf32> to vector<8x1xf32>
    %58 = arith.mulf %55, %55 : vector<8x512xf32>
    %cst_13 = arith.constant dense<0.000000e+00> : vector<8xf32>
    %59 = vector.multi_reduction <add>, %58, %cst_13 [1] : vector<8x512xf32> to vector<8xf32>
    %60 = vector.shape_cast %59 : vector<8xf32> to vector<8x1xf32>
    %cst_14 = arith.constant 0.00255102036 : f32
    %61 = vector.broadcast %cst_14 : f32 to vector<8x1xf32>
    %62 = arith.mulf %57, %61 : vector<8x1xf32>
    %cst_15 = arith.constant 0.00255102036 : f32
    %63 = vector.broadcast %cst_15 : f32 to vector<8x1xf32>
    %64 = arith.mulf %60, %63 : vector<8x1xf32>
    %65 = arith.mulf %62, %62 : vector<8x1xf32>
    %66 = arith.subf %64, %65 : vector<8x1xf32>
    %cst_16 = arith.constant 0.000000e+00 : f32
    %67 = vector.broadcast %cst_16 : f32 to vector<8x1xf32>
    %68 = arith.maximumf %66, %67 : vector<8x1xf32>
    %c0_17 = arith.constant 0 : index
    %c0_18 = arith.constant 0 : index
    %69 = vector.load %arg3[%c0_17, %c0_18] : memref<8x1xf32, #tpu.memory_space<vmem>>, vector<8x1xf32>
    %cst_19 = arith.constant 9.99999974E-6 : f32
    %70 = vector.broadcast %cst_19 : f32 to vector<8x1xf32>
    %71 = arith.addf %68, %70 : vector<8x1xf32>
    %72 = math.rsqrt %71 : vector<8x1xf32>
    %73 = arith.mulf %69, %72 : vector<8x1xf32>
    %c0_20 = arith.constant 0 : index
    %c0_21 = arith.constant 0 : index
    %74 = vector.load %arg4[%c0_20, %c0_21] : memref<8x1xf32, #tpu.memory_space<vmem>>, vector<8x1xf32>
    %75 = arith.mulf %62, %73 : vector<8x1xf32>
    %76 = arith.subf %74, %75 : vector<8x1xf32>
    %77 = vector.broadcast %73 : vector<8x1xf32> to vector<8x512xf32>
    %78 = arith.mulf %13, %77 : vector<8x512xf32>
    %79 = vector.broadcast %76 : vector<8x1xf32> to vector<8x512xf32>
    %80 = arith.addf %78, %79 : vector<8x512xf32>
    %cst_22 = arith.constant 0.000000e+00 : f32
    %81 = vector.broadcast %cst_22 : f32 to vector<8x512xf32>
    %82 = arith.cmpf ogt, %80, %81 : vector<8x512xf32>
    %cst_23 = arith.constant 2.000000e-01 : f32
    %83 = vector.broadcast %cst_23 : f32 to vector<8x512xf32>
    %84 = arith.mulf %83, %80 : vector<8x512xf32>
    %85 = arith.select %82, %80, %84 : vector<8x512xi1>, vector<8x512xf32>
    %c0_24 = arith.constant 0 : index
    %c0_25 = arith.constant 0 : index
    %86 = vector.load %arg5[%c0_24, %c0_25] : memref<8x512xf32, #tpu.memory_space<vmem>>, vector<8x512xf32>
    tpu.vector_store %arg5[%c0_24, %c0_25], %85 {strides = array<i32>} : memref<8x512xf32, #tpu.memory_space<vmem>>, vector<8x512xf32>,
    return
  }
  func.func @transform_0(%arg0: i32) -> (i32, i32) {
    %c0_i32 = arith.constant 0 : i32
    %c0_i32_0 = arith.constant 0 : i32
    %c0_i32_1 = arith.constant 0 : i32
    return %c0_i32, %c0_i32_0 : i32, i32
  }
  func.func @transform_1(%arg0: i32) -> (i32, i32) {
    %c0_i32 = arith.constant 0 : i32
    %c0_i32_0 = arith.constant 0 : i32
    return %arg0, %c0_i32 : i32, i32
  }
  func.func @transform_2(%arg0: i32) -> (i32, i32) {
    %c0_i32 = arith.constant 0 : i32
    %c0_i32_0 = arith.constant 0 : i32
    return %arg0, %c0_i32 : i32, i32
  }
  func.func @transform_3(%arg0: i32) -> (i32, i32) {
    %c0_i32 = arith.constant 0 : i32
    %c0_i32_0 = arith.constant 0 : i32
    return %arg0, %c0_i32 : i32, i32
  }
  func.func @transform_4(%arg0: i32) -> (i32, i32) {
    %c0_i32 = arith.constant 0 : i32
    %c0_i32_0 = arith.constant 0 : i32
    return %arg0, %c0_i32 : i32, i32
  }
}

</mosaic_0001>

<bundles_post_ra>
// kernel: basic_conv.1
= control target key start
LH: loop header
LB: loop body
LE: loop exit
PB: predicated region body
PF: predicated region fallthrough
CT: control target
= control target key end

     0   :  { %s603_s19 = smov 111   ;;  %s604_s20 = smov 94   ;;  %v611_v14 = vmov 0   ;;  %vm174_vm0 = vcmask 769024   ;;  %vm98_vm1 = vcmask 908288   ;;  %vm117_vm2 = vcmask 900096   ;;  %s792_s0 = inlined_call_operand.vmem [shape: f32[4,640], index: 0, kind: input, shape index: {}]   ;;  %s793_s1 = inlined_call_operand.vmem [shape: bf16[8,36], index: 1, kind: input, shape index: {}]   ;;  %s794_s2 = inlined_call_operand.vmem [shape: f32[8,1], index: 2, kind: input, shape index: {}]   ;;  %s795_s3 = inlined_call_operand.vmem [shape: f32[8,1], index: 3, kind: input, shape index: {}]   ;;  %s796_s4 = inlined_call_operand.vmem [shape: f32[8,512], index: 4, kind: output, shape index: {}]  }
   0x1   :  { %v640_v0 = vld [vmem:[%s792_s0] sm:$0xff]  ;;  %v645_v1 = vld [vmem:[%s792_s0 + $0x8] sm:$0xff]  ;;  %s605_s21 = smov 110   ;;  %s606_s22 = smov 95   ;;  %v20_v12 = vld [vmem:[%s792_s0 + $0x10] sm:$0xf]  ;;  %262 = vmatprep.mubr.bf16.mxu0 %v611_v14  ;;  %303 = vmatprep.mubr.bf16.mxu1 %v611_v14 }
   0x2   :  { %v649_v2 = vcombine.high %v640_v0, %v640_v0  ;;  %v29_v3 = vcombine.low %v645_v1, %v645_v1  ;;  %v655_v4 = vcombine.high %v645_v1, %v645_v1  ;;  %v28_v9 = vcombine.low %v640_v0, %v640_v0  ;;  %s607_s23 = smov 96   ;;  %s608_s26 = smov 127   ;;  %594 = vset.pattern.permute.xlu0 %v611_v14 }
   0x3   :  { %s609_s27 = smov 112   ;;  %s610_s28 = smov 126   ;;  %v30_v13 = vcombine.low %v20_v12, %v20_v12  ;;  %595 = vset.pattern.permute.xlu1 %v611_v14  ;;  %vm155_vm3 = vcmask 777216   ;;  %vm217_vm4 = vcmask 1041408   ;;  %vm136_vm5 = vcmask 785408  }
   0x4   :  { %v524_v5 = vpack.i.bf16 %v645_v1, %v649_v2  ;;  %v514_v6 = vpack.i.bf16 %v649_v2, %v640_v0  ;;  %v529_v7 = vpack.i.bf16 %v29_v3, %v640_v0  ;;  %v519_v8 = vpack.i.bf16 %v655_v4, %v645_v1 }
   0x5   :  { %v549_v10 = vpack.i.bf16 %v645_v1, %v28_v9  ;;  %v544_v11 = vpack.i.bf16 %v655_v4, %v640_v0  ;;  %vm183_vm6 = vcmask 1043456   ;;  %vm41_vm7 = vcmask 1039360  }
   0x6   :  { %525 = vrot.lane.b32.xlu1 %v524_v5, %s603_s19  ;;  %515 = vrot.lane.b32.xlu0 %v514_v6, %s604_s20  ;;  %vm79_vm8 = vcmask 916480   ;;  %vm60_vm9 = vcmask 1031168   ;;  %vm213_vm10 = vcmask 293888  }
   0xa   :  { %530 = vrot.lane.b32.xlu1 %v529_v7, %s605_s21  ;;  %520 = vrot.lane.b32.xlu0 %v519_v8, %s604_s20 }
   0xe   :  { %540 = vrot.lane.b32.xlu1 %v529_v7, %s606_s22  ;;  %535 = vrot.lane.b32.xlu0 %v524_v5, %s607_s23 }
  0x12   :  { %550 = vrot.lane.b32.xlu1 %v549_v10, %s605_s21  ;;  %545 = vrot.lane.b32.xlu0 %v544_v11, %s603_s19 }
  0x16   :  { %560 = vrot.lane.b32.xlu1 %v549_v10, %s606_s22  ;;  %555 = vrot.lane.b32.xlu0 %v544_v11, %s607_s23 }
  0x1a   :  { %565 = vrot.lane.b32.xlu1 %v529_v7, %s608_s26  ;;  %172 = vrot.lane.b32.xlu0 %v20_v12, %s604_s20 }
  0x1e   :  { %575 = vrot.lane.b32.xlu1 %v529_v7, %s609_s27  ;;  %570 = vrot.lane.b32.xlu0 %v524_v5, %s610_s28 }
  0x22   :  { %115 = vrot.lane.b32.xlu1 %v30_v13, %s605_s21  ;;  %96 = vrot.lane.b32.xlu0 %v20_v12, %s603_s19 }
  0x26   :  { %153 = vrot.lane.b32.xlu1 %v30_v13, %s606_s22  ;;  %134 = vrot.lane.b32.xlu0 %v20_v12, %s607_s23 }
  0x2a   :  { %585 = vrot.lane.b32.xlu1 %v544_v11, %s610_s28  ;;  %580 = vrot.lane.b32.xlu0 %v549_v10, %s608_s26 }
  0x2e   :  { %39 = vrot.lane.b32.xlu1 %v30_v13, %s608_s26  ;;  %590 = vrot.lane.b32.xlu0 %v549_v10, %s609_s27 }
  0x32   :  { %77 = vrot.lane.b32.xlu1 %v30_v13, %s609_s27  ;;  %58 = vrot.lane.b32.xlu0 %v20_v12, %s610_s28 }
  0x78   :  { %v675_v15 = vpop.permute.xlu1 %525  ;;  %v516_v16 = vpop.permute.xlu0 %515 }
  0x79   :  { %v518_v17 = vunpack.i.h.bf16 %v516_v16  ;;  %v517_v18 = vunpack.i.l.bf16 %v516_v16  ;;  %v528_v27 = vunpack.i.h.bf16 %v675_v15  ;;  %v527_v28 = vunpack.i.l.bf16 %v675_v15 }
  0x7b   :  { %v175_v19 = vsel %vm174_vm0, %v517_v18, %v518_v17  ;;  %v100_v40 = vsel %vm98_vm1, %v527_v28, %v528_v27 }
  0x7c   :  { %v678_v20 = vpop.permute.xlu1 %530  ;;  %v521_v21 = vpop.permute.xlu0 %520  ;;  %v209_v25 = vpack.c.bf16 %v175_v19, %v175_v19 }
  0x7d   :  { %v522_v22 = vunpack.i.l.bf16 %v521_v21  ;;  %v533_v23 = vunpack.i.h.bf16 %v678_v20  ;;  %v532_v24 = vunpack.i.l.bf16 %v678_v20  ;;  %v523_v41 = vunpack.i.h.bf16 %v521_v21 }
  0x7e   :  { %v219_v37 = vsel %vm217_vm4, %v209_v25, 0 }
  0x7f   :  { %v176_v26 = vsel %vm174_vm0, %v518_v17, %v522_v22  ;;  %v119_v36 = vsel %vm117_vm2, %v532_v24, %v533_v23  ;;  %v177_v51 = vsel %vm174_vm0, %v522_v22, %v523_v41 }
  0x80   :  { %v685_v29 = vpop.permute.xlu1 %540  ;;  %v687_v30 = vpop.permute.xlu0 %535  ;;  %v210_v31 = vpack.c.bf16 %v176_v26, %v176_v26  ;;  %v193_v47 = vsel %vm183_vm6, %v100_v40, %v119_v36  ;;  %v211_v62 = vpack.c.bf16 %v177_v51, %v177_v51 }
  0x81   :  { %v543_v32 = vunpack.i.h.bf16 %v685_v29  ;;  %v542_v33 = vunpack.i.l.bf16 %v685_v29  ;;  %v538_v34 = vunpack.i.h.bf16 %v687_v30  ;;  %v537_v35 = vunpack.i.l.bf16 %v687_v30 }
  0x82   :  { %501 = vmatprep.subr.msk.bf16.mxu0 %vm217_vm4, %v210_v31  ;;  %v225_v11 = vsel %vm217_vm4, %v211_v62, 0 }
  0x83   :  { %v157_v38 = vsel %vm155_vm3, %v542_v33, %v543_v32  ;;  %v138_v39 = vsel %vm136_vm5, %v537_v35, %v538_v34  ;;  %241 = vmatpush1.bf16.msra.mxu0 %v219_v37 }
  0x84   :  { %v551_v42 = vpop.permute.xlu1 %550  ;;  %v546_v43 = vpop.permute.xlu0 %545  ;;  %v197_v44 = vsel %vm183_vm6, %v138_v39, %v157_v38 }
  0x85   :  { %v552_v45 = vunpack.i.l.bf16 %v551_v42  ;;  %v547_v46 = vunpack.i.l.bf16 %v546_v43  ;;  %v206_v48 = vpack.c.bf16 %v197_v44, %v193_v47  ;;  %v553_v22 = vunpack.i.h.bf16 %v551_v42 }
  0x87   :  { %242 = vmatprep.subr.bf16.mxu0 %v206_v48  ;;  %v118_v52 = vsel %vm117_vm2, %v552_v45, %v532_v24  ;;  %v99_v53 = vsel %vm98_vm1, %v547_v46, %v527_v28  ;;  %v548_v24 = vunpack.i.h.bf16 %v546_v43 }
  0x88   :  { %v561_v49 = vpop.permute.xlu1 %560  ;;  %v556_v50 = vpop.permute.xlu0 %555  ;;  %v192_v60 = vsel %vm183_vm6, %v99_v53, %v118_v52 }
  0x89   :  { %v562_v54 = vunpack.i.l.bf16 %v561_v49  ;;  %v557_v55 = vunpack.i.l.bf16 %v556_v50  ;;  %v563_v17 = vunpack.i.h.bf16 %v561_v49  ;;  %v558_v18 = vunpack.i.h.bf16 %v556_v50 }
  0x8a   :  { %v101_v39 = vsel %vm98_vm1, %v528_v27, %v548_v24 }
  0x8b   :  { %v156_v56 = vsel %vm155_vm3, %v562_v54, %v542_v33  ;;  %v137_v57 = vsel %vm136_vm5, %v557_v55, %v537_v35  ;;  %v158_v35 = vsel %vm155_vm3, %v543_v32, %v563_v17  ;;  %v139_v36 = vsel %vm136_vm5, %v538_v34, %v558_v18 }
  0x8c   :  { %v714_v58 = vpop.permute.xlu1 %565  ;;  %v173_v59 = vpop.permute.xlu0 %172  ;;  %v196_v61 = vsel %vm183_vm6, %v137_v57, %v156_v56  ;;  %v198_v34 = vsel %vm183_vm6, %v139_v36, %v158_v35 }
  0x8d   :  { %v568_v63 = vunpack.i.h.bf16 %v714_v58  ;;  %v567_v3 = vunpack.i.l.bf16 %v714_v58  ;;  %v205_v5 = vpack.c.bf16 %v196_v61, %v192_v60  ;;  %v178_v6 = vsel %vm174_vm0, %v523_v41, %v173_v59 }
  0x8e   :  { %v212_v7 = vpack.c.bf16 %v178_v6, %v178_v6 }
  0x8f   :  { %243 = vmatpush1.bf16.msra.mxu0 %v205_v5  ;;  %v43_v8 = vsel %vm41_vm7, %v567_v3, %v568_v63 }
  0x90   :  { %v576_v9 = vpop.permute.xlu1 %575  ;;  %v571_v10 = vpop.permute.xlu0 %570  ;;  %503 = vmatprep.subr.msk.bf16.mxu1 %vm217_vm4, %v212_v7  ;;  %v185_v28 = vsel %vm183_vm6, %v649_v2, %v43_v8  ;;  %v120_v2 = vsel %vm117_vm2, %v533_v23, %v553_v22 }
  0x91   :  { %v578_v12 = vunpack.i.h.bf16 %v576_v9  ;;  %v577_v13 = vunpack.i.l.bf16 %v576_v9  ;;  %v573_v14 = vunpack.i.h.bf16 %v571_v10  ;;  %v572_v16 = vunpack.i.l.bf16 %v571_v10  ;;  %282 = vmatpush1.bf16.msra.mxu1 %v225_v11 }
  0x92   :  { %v194_v20 = vsel %vm183_vm6, %v101_v39, %v120_v2 }
  0x93   :  { %v81_v19 = vsel %vm79_vm8, %v577_v13, %v578_v12  ;;  %v62_v21 = vsel %vm60_vm9, %v572_v16, %v573_v14  ;;  %v207_v15 = vpack.c.bf16 %v198_v34, %v194_v20 }
  0x94   :  { %v116_v25 = vpop.permute.xlu1 %115  ;;  %v97_v26 = vpop.permute.xlu0 %96  ;;  %v189_v31 = vsel %vm183_vm6, %v62_v21, %v81_v19 }
  0x95   :  { %v202_v33 = vpack.c.bf16 %v189_v31, %v185_v28  ;;  %v121_v37 = vsel %vm117_vm2, %v553_v22, %v116_v25  ;;  %v102_v38 = vsel %vm98_vm1, %v548_v24, %v97_v26 }
  0x96   :  { %v195_v41 = vsel %vm183_vm6, %v102_v38, %v121_v37 }
  0x97   :  { %244 = vmatprep.subr.bf16.mxu0 %v202_v33 }
  0x98   :  { %v154_v29 = vpop.permute.xlu1 %153  ;;  %v135_v40 = vpop.permute.xlu0 %134 }
  0x99   :  { %v159_v32 = vsel %vm155_vm3, %v563_v17, %v154_v29  ;;  %v140_v30 = vsel %vm136_vm5, %v558_v18, %v135_v40 }
  0x9a   :  { %v199_v42 = vsel %vm183_vm6, %v140_v30, %v159_v32 }
  0x9b   :  { %v208_v43 = vpack.c.bf16 %v199_v42, %v195_v41 }
  0x9c   :  { %v586_v23 = vpop.permute.xlu1 %585  ;;  %v581_v44 = vpop.permute.xlu0 %580 }
  0x9d   :  { %v582_v45 = vunpack.i.l.bf16 %v581_v44  ;;  %283 = vmatprep.subr.bf16.mxu1 %v208_v43  ;;  %v587_v27 = vunpack.i.l.bf16 %v586_v23  ;;  %v588_v46 = vunpack.i.h.bf16 %v586_v23  ;;  %v583_v47 = vunpack.i.h.bf16 %v581_v44 }
  0x9e   :  { %284 = vmatpush1.bf16.msra.mxu1 %v207_v15 }
  0x9f   :  { %v42_v50 = vsel %vm41_vm7, %v582_v45, %v567_v3  ;;  %v61_v53 = vsel %vm60_vm9, %v587_v27, %v572_v16  ;;  %v63_v57 = vsel %vm60_vm9, %v573_v14, %v588_v46  ;;  %v44_v59 = vsel %vm41_vm7, %v568_v63, %v583_v47 }
  0xa0   :  { %v40_v48 = vpop.permute.xlu1 %39  ;;  %v591_v49 = vpop.permute.xlu0 %590  ;;  %v184_v62 = vsel %vm183_vm6, %v640_v0, %v42_v50  ;;  %v200_v0 = vld [vmem:[%s793_s1] sm:$0xf]  ;;  %v186_v10 = vsel %vm183_vm6, %v645_v1, %v44_v59 }
  0xa1   :  { %v593_v51 = vunpack.i.h.bf16 %v591_v49  ;;  %v592_v52 = vunpack.i.l.bf16 %v591_v49  ;;  %v45_v54 = vsel %vm41_vm7, %v583_v47, %v40_v48 }
  0xa2   :  { %v187_v9 = vsel %vm183_vm6, %v655_v4, %v45_v54 }
  0xa3   :  { %v82_v55 = vsel %vm79_vm8, %v578_v12, %v593_v51  ;;  %v80_v56 = vsel %vm79_vm8, %v592_v52, %v577_v13  ;;  %v312_v12 = vlaneseq  ;;  %v456_v52 = vld [vmem:[%s794_s2] sm:$0xff] }
  0xa4   :  { %v78_v60 = vpop.permute.xlu1 %77  ;;  %v59_v61 = vpop.permute.xlu0 %58  ;;  %v188_v3 = vsel %vm183_vm6, %v61_v53, %v80_v56  ;;  %v190_v8 = vsel %vm183_vm6, %v63_v57, %v82_v55  ;;  %v460_v55 = vld [vmem:[%s795_s3] sm:$0xff] }
  0xa5   :  { %v83_v5 = vsel %vm79_vm8, %v593_v51, %v78_v60  ;;  %v64_v6 = vsel %vm60_vm9, %v588_v46, %v59_v61  ;;  %v201_v7 = vpack.c.bf16 %v188_v3, %v184_v62  ;;  %v203_v11 = vpack.c.bf16 %v190_v8, %v186_v10 }
  0xa6   :  { %v191_v58 = vsel %vm183_vm6, %v64_v6, %v83_v5  ;;  %v313_v13 = vand.u32 127, %v312_v12 }
  0xa7   :  { %245 = vmatpush1.bf16.msra.mxu0 %v201_v7  ;;  %v204_v63 = vpack.c.bf16 %v191_v58, %v187_v9 }
  0xa8   :  { %v314_v4 = vadd.s32 128, %v313_v13  ;;  %v316_v14 = vadd.s32 384, %v313_v13  ;;  %v315_v17 = vadd.s32 256, %v313_v13  ;;  %v321_v18 = vand.u32 255, %v313_v13 }
  0xa9   :  { %285 = vmatprep.subr.bf16.mxu1 %v204_v63 }
  0xaa   :  { %502 = vmatmul.mubr.msk.bf16.vlgmr.msra.gmra.mxu0 %vm213_vm10, %v200_v0  ;;  %286 = vmatpush1.bf16.msra.mxu1 %v203_v11  ;;  %v328_v16 = vand.u32 255, %v314_v4  ;;  %v342_v19 = vand.u32 255, %v316_v14  ;;  %v335_v22 = vand.u32 255, %v315_v17  ;;  %v373_v24 = vand.u32 15, %v321_v18 }
  0xac   :  { %v380_v21 = vand.u32 15, %v328_v16  ;;  %v394_v25 = vand.u32 15, %v342_v19  ;;  %vm366_vm11 = vcmp.lt.s32.totalorder %v328_v16, 224  ;;  %v387_v1 = vand.u32 15, %v335_v22 }
  0xad   :  { %504 = vmatmul.mubr.msk.bf16.vlgmr.msra.gmra.mxu1 %vm213_vm10, %v200_v0  ;;  %vm417_vm13 = vcmp.lt.s32.totalorder %v373_v24, 14  ;;  %vm368_vm15 = vcmp.lt.s32.totalorder %v342_v19, 224 }
  0xae   :  { %vm418_vm12 = vcmp.lt.s32.totalorder %v380_v21, 14  ;;  %vm420_vm0 = vcmp.lt.s32.totalorder %v394_v25, 14  ;;  %vm419_vm1 = vcmp.lt.s32.totalorder %v387_v1, 14 }
  0xaf   :  { %vm422_vm14 = vmand %vm366_vm11, %vm418_vm12 }
  0xb0   :  { %vm424_vm2 = vmand %vm368_vm15, %vm420_vm0 }
 0x16a   :  { %v264_v26 = vpop.f32.mrf.mxu0 }
 0x16b   :  { %v433_v28 = vsel %vm417_vm13, %v264_v26, 0.0 }
 0x16c   :  { %v266_v31 = vpop.f32.mrf.mxu0  ;;  %v442_v36 = vmul.f32 %v433_v28, %v433_v28 }
 0x16d   :  { %v434_v33 = vsel %vm422_vm14, %v266_v31, 0.0  ;;  %v305_v35 = vpop.f32.mrf.mxu1 }
 0x16e   :  { %v437_v37 = vadd.f32 %v434_v33, %v433_v28  ;;  %v443_v38 = vmul.f32 %v434_v33, %v434_v33  ;;  %v435_v2 = vsel %vm419_vm1, %v305_v35, 0.0  ;;  %v268_v39 = vpop.f32.mrf.mxu0 }
 0x16f   :  { %v444_v29 = vmul.f32 %v435_v2, %v435_v2  ;;  %v307_v40 = vpop.f32.mrf.mxu1 }
 0x170   :  { %v446_v32 = vadd.f32 %v443_v38, %v442_v36  ;;  %v438_v30 = vadd.f32 %v437_v37, %v435_v2  ;;  %v436_v34 = vsel %vm424_vm2, %v307_v40, 0.0  ;;  %v269_v41 = vpop.f32.mrf.mxu0 }
 0x171   :  { %v445_v42 = vmul.f32 %v436_v34, %v436_v34  ;;  %v309_v43 = vpop.f32.mrf.mxu1 }
 0x172   :  { %v439_v20 = vadd.f32 %v438_v30, %v436_v34  ;;  %v447_v23 = vadd.f32 %v446_v32, %v444_v29 }
 0x173   :  { %v310_v44 = vpop.f32.mrf.mxu1 }
 0x174   :  { %440 = vadd.xlane.f32.xlu0 %v439_v20  ;;  %v448_v15 = vadd.f32 %v447_v23, %v445_v42 }
 0x176   :  { %449 = vadd.xlane.f32.xlu1 %v448_v15 }
 0x1fd   :  { %v441_v45 = vpop.xlane.xlu0 %440 }
 0x1fe   :  { %v451_v27 = vmul.f32 0.0025510204, %v441_v45 }
 0x1ff   :  { %v450_v46 = vpop.xlane.xlu1 %449 }
 0x200   :  { %v453_v47 = vmul.f32 %v451_v27, %v451_v27  ;;  %v452_v48 = vmul.f32 0.0025510204, %v450_v46 }
 0x202   :  { %v454_v49 = vsub.f32 %v452_v48, %v453_v47 }
 0x204   :  { %v455_v50 = vmax.f32 %v454_v49, 0.0 }
 0x206   :  { %v457_v51 = vadd.f32 1e-05, %v455_v50 }
 0x208   :  { %601 = vrsqrt.f32 %v457_v51 }
 0x215   :  { %v602_v53 = vpop.eup %601 }
 0x216   :  { %v459_v54 = vmul.f32 %v602_v53, %v456_v52 }
 0x218   :  { %465 = vperm.xlu0 %594, %v459_v54   ;;  %v461_v56 = vmul.f32 %v459_v54, %v451_v27 }
 0x21a   :  { %v462_v57 = vsub.f32 %v460_v55, %v461_v56 }
 0x21c   :  { %474 = vperm.xlu1 %595, %v462_v57  }
 0x293   :  { %v466_v59 = vpop.permute.xlu0 %465 }
 0x294   :  { %v468_v60 = vmul.f32 %v466_v59, %v264_v26  ;;  %v469_v61 = vmul.f32 %v466_v59, %v266_v31  ;;  %v470_v62 = vmul.f32 %v466_v59, %v305_v35  ;;  %v471_v3 = vmul.f32 %v466_v59, %v307_v40 }
 0x297   :  { %v475_v5 = vpop.permute.xlu1 %474 }
 0x298   :  { %v477_v6 = vadd.f32 %v475_v5, %v468_v60  ;;  %v478_v7 = vadd.f32 %v475_v5, %v469_v61  ;;  %v479_v8 = vadd.f32 %v475_v5, %v470_v62  ;;  %v480_v9 = vadd.f32 %v475_v5, %v471_v3 }
 0x29a   :  { %vm481_vm3 = vcmp.gt.f32.partialorder %v477_v6, 0.0  ;;  %vm482_vm4 = vcmp.gt.f32.partialorder %v478_v7, 0.0  ;;  %vm483_vm5 = vcmp.gt.f32.partialorder %v479_v8, 0.0  ;;  %vm484_vm6 = vcmp.gt.f32.partialorder %v480_v9, 0.0 }
 0x29b   :  { %v485_v58 = vmul.f32 0.2, %v477_v6  ;;  %v486_v63 = vmul.f32 0.2, %v478_v7  ;;  %v487_v0 = vmul.f32 0.2, %v479_v8 }
 0x29c   :  { %v488_v10 = vmul.f32 0.2, %v480_v9 }
 0x29d   :  { %v489_v11 = vsel %vm481_vm3, %v477_v6, %v485_v58  ;;  %v490_v12 = vsel %vm482_vm4, %v478_v7, %v486_v63  ;;  %v491_v13 = vsel %vm483_vm5, %v479_v8, %v487_v0 }
 0x29e   :  { %v492_v4 = vsel %vm484_vm6, %v480_v9, %v488_v10  ;;  %493 = vst [vmem:[%s796_s4] sm:$0xff] %v489_v11  ;;  %494 = vst [vmem:[%s796_s4 + $0x8] sm:$0xff] %v490_v12 }
 0x29f   :  { %495 = vst [vmem:[%s796_s4 + $0x10] sm:$0xff] %v491_v13  ;;  %496 = vst [vmem:[%s796_s4 + $0x18] sm:$0xff] %v492_v4 }

</bundles_post_ra>
